<compile_context>
chip_gen: v5e
topology: v5e:2x2
jax: 0.10.0
libtpu: 0.0.40
codegen_flags: <defaults>
</compile_context>

<pallas_src>
import functools

import jax
import jax.numpy as jnp
from jax import lax
from jax.experimental import pallas as pl
from jax.experimental.pallas import tpu as pltpu


HIDDEN = 768        # BERT hidden size (6 * 128 lanes)
NUM_LABELS = 9
DP_PROB = 0.1
VOCAB = 100
LANE = 128          # label dim padded to one full lane width


def _round_up(x, m):
    return ((x + m - 1) // m) * m


def _hash_bits_u31(shape, row_offset, seed):
    """Interpret-mode fallback: 31 uniform bits per element from an int32
    avalanche hash of (seed, global element index).  Only used when the
    hardware PRNG is unavailable (e.g. CPU interpreter)."""
    _, h = shape
    rid = lax.broadcasted_iota(jnp.int32, shape, 0)
    cid = lax.broadcasted_iota(jnp.int32, shape, 1)
    idx = (row_offset + rid) * jnp.int32(h) + cid
    x = idx ^ (seed * jnp.int32(0x61C88647))
    x = (x ^ lax.shift_right_logical(x, 16)) * jnp.int32(0x045D9F3B)
    x = (x ^ lax.shift_right_logical(x, 16)) * jnp.int32(0x045D9F3B)
    x = x ^ lax.shift_right_logical(x, 16)
    return x & jnp.int32(0x7FFFFFFF)


def _ner_head_kernel(seed_ref, x_ref, w_ref, b_ref, o_ref, *,
                     dp_prob, train, use_hw_prng):
    """Dropout(x) @ W_padded + b_padded for one [TR, 768] row tile."""
    # In-kernel cast: activations arrive in producer dtype (f32); bf16 is only
    # materialized in VMEM/vregs, never written back to HBM by a separate pass.
    x = x_ref[...].astype(jnp.bfloat16)                       # [TR, 768]

    if train and dp_prob > 0.0:
        keep_prob = 1.0 - dp_prob
        thresh = jnp.int32(int(keep_prob * 2147483648.0))     # 31-bit threshold
        if use_hw_prng:
            # Hardware PRNG: seed once per tile with (seed, tile_id) so tiles
            # get decorrelated streams; mask costs ~2 VALU ops per element.
            pltpu.prng_seed(seed_ref[0], pl.program_id(0))
            bits = pltpu.bitcast(pltpu.prng_random_bits(x.shape), jnp.int32)
            u31 = bits & jnp.int32(0x7FFFFFFF)
        else:
            # Deterministic interpret-mode fallback (no pltpu.prng_* needed).
            row_off = pl.program_id(0) * x.shape[0]
            u31 = _hash_bits_u31(x.shape, row_off, seed_ref[0])
        keep = u31 < thresh
        # The 1/(1-p) inverted-dropout scale is pre-folded into W in the
        # wrapper, so only the zero/keep select remains on the hot path.
        x = jnp.where(keep, x, jnp.zeros_like(x))

    # MXU matmul (bf16 inputs, f32 accumulate) + bias broadcast, lane-dense out.
    o_ref[...] = (
        jnp.dot(x, w_ref[...], preferred_element_type=jnp.float32) + b_ref[...]
    ).astype(o_ref.dtype)


def ner_head(hidden_bsh, w_hl, b_l, seed, *, dp_prob=DP_PROB, train=True,
             tile_rows=2048, use_hw_prng=True, out_dtype=jnp.float32):
    """hidden_bsh: [B, S, 768] -> logits [B, S, num_labels] (out_dtype)."""
    B, S, H = hidden_bsh.shape
    L = w_hl.shape[1]
    rows = B * S

    # Free metadata reshape; no standalone cast / copy pass over the slab.
    x2 = hidden_bsh.reshape(rows, H)

    # Row tiling: multiple of 8 sublanes.  tr=2048 f32 tile is ~6.3 MiB
    # (~15 MiB total double-buffered incl. output), safe on every generation
    # with the explicit vmem limit below.
    tr = min(tile_rows, _round_up(rows, 8))
    rows_p = _round_up(rows, tr)
    if rows_p != rows:
        # TODO(synk): the ragged tail could be handled with a masked last tile
        # inside the kernel instead of this extra HBM pad pass.
        x2 = jnp.pad(x2, ((0, rows_p - rows), (0, 0)))

    # Lane-dense classifier: pad L -> 128 and fold the inverted-dropout scale
    # into the tiny weight (dropout(x) @ W == (keep*x) @ (W/(1-p))).
    scale = 1.0 / (1.0 - dp_prob) if (train and dp_prob > 0.0) else 1.0
    w_p = jnp.zeros((H, LANE), jnp.bfloat16)
    w_p = w_p.at[:, :L].set((w_hl.astype(jnp.float32) * scale).astype(jnp.bfloat16))
    b_p = jnp.zeros((1, LANE), jnp.float32).at[:, :L].set(b_l.astype(jnp.float32))

    seed_arr = jnp.array([seed], dtype=jnp.int32)
    kernel = functools.partial(_ner_head_kernel, dp_prob=dp_prob, train=train,
                               use_hw_prng=use_hw_prng)

    out = pl.pallas_call(
        kernel,
        out_shape=jax.ShapeDtypeStruct((rows_p, LANE), out_dtype),
        grid_spec=pltpu.PrefetchScalarGridSpec(
            num_scalar_prefetch=1,                 # seed lands in SMEM
            grid=(rows_p // tr,),
            in_specs=[
                pl.BlockSpec((tr, H), lambda i, seed: (i, 0)),      # activations
                pl.BlockSpec((H, LANE), lambda i, seed: (0, 0)),    # resident W
                pl.BlockSpec((1, LANE), lambda i, seed: (0, 0)),    # resident b
            ],
            out_specs=pl.BlockSpec((tr, LANE), lambda i, seed: (i, 0)),
        ),
        compiler_params=pltpu.CompilerParams(
            dimension_semantics=("parallel",),     # row tiles are independent
            vmem_limit_bytes=32 << 20,             # explicit, safe v5e..v7x
        ),
    )(seed_arr, x2, w_p, b_p)

    # NOTE: keeping the padded [rows_p, 128] slab and masking in the consumer
    # (e.g. the loss) would save this extra pass over the output.
    return out[:rows, :L].reshape(B, S, L)


def synthetic_bert_backbone(ids, mask, emb_table):
    """Deterministic stand-in for bert_model(input_ids, attention_mask)[0].

    Plain-JAX glue: embedding lookup masked by the attention mask, producing a
    [B, S, 768] "last_hidden_state".
    """
    hidden = jnp.take(emb_table, ids, axis=0)  # [B, S, 768]
    return hidden * mask[..., None].astype(hidden.dtype)


def ner_bert_model_forward(params, ids, mask, seed, *, train=True,
                           use_hw_prng=True):
    hidden = synthetic_bert_backbone(ids, mask, params["emb"])
    return ner_head(hidden, params["ll_w"], params["ll_b"], seed,
                    dp_prob=DP_PROB, train=train, use_hw_prng=use_hw_prng)


if __name__ == "__main__":
    key = jax.random.PRNGKey(0)
    k_emb, k_w, k_b, k_ids = jax.random.split(key, 4)

    B, S = 2, 8

    params = {
        # synthetic BERT embedding table (stand-in backbone weights)
        "emb": 0.02 * jax.random.normal(k_emb, (VOCAB, HIDDEN), jnp.float32),
        # classifier head: nn.Linear(768, num_labels); stored as [H, L]
        "ll_w": 0.02 * jax.random.normal(k_w, (HIDDEN, NUM_LABELS), jnp.float32),
        "ll_b": 0.01 * jax.random.normal(k_b, (NUM_LABELS,), jnp.float32),
    }

    ids = jax.random.randint(k_ids, (B, S), 0, VOCAB, dtype=jnp.int32)
    mask = jnp.ones((B, S), dtype=jnp.int32)

    use_hw_prng = jax.default_backend() == "tpu"

    logits = ner_bert_model_forward(params, ids, mask, seed=0, train=True,
                                    use_hw_prng=use_hw_prng)
    logits = jax.block_until_ready(logits)

    assert logits.shape == (B, S, NUM_LABELS), logits.shape
    assert logits.dtype == jnp.float32
    assert bool(jnp.all(jnp.isfinite(logits)))

    # Eval mode (dropout disabled) must also run clean.
    logits_eval = ner_bert_model_forward(params, ids, mask, seed=0, train=False,
                                         use_hw_prng=use_hw_prng)
    logits_eval = jax.block_until_ready(logits_eval)
    assert logits_eval.shape == (B, S, NUM_LABELS)
    assert bool(jnp.all(jnp.isfinite(logits_eval)))

    print("KERNEL_OK")
</pallas_src>

<mosaic_0001>
module attributes {stable_mosaic.version = 11 : i64} {
  func.func @_ner_head_kernel(%arg0: i32, %arg1: memref<1xi32, #tpu.memory_space<smem>>, %arg2: memref<16x768xf32, #tpu.memory_space<vmem>>, %arg3: memref<768x128xbf16, #tpu.memory_space<vmem>>, %arg4: memref<1x128xf32, #tpu.memory_space<vmem>>, %arg5: memref<16x128xf32, #tpu.memory_space<vmem>>) attributes {dimension_semantics = [#tpu.dimension_semantics<parallel>], iteration_bounds = array<i64: 1>, scalar_prefetch = 1 : i64, scratch_operands = 0 : i64, tpu.core_type = #tpu.core_type<tc>, window_params = [{transform_indices = @transform_0, window_bounds = array<i64: 16, 768>}, {pipeline_mode = #tpu.pipeline_mode<synchronous>, transform_indices = @transform_1, window_bounds = array<i64: 768, 128>}, {pipeline_mode = #tpu.pipeline_mode<synchronous>, transform_indices = @transform_2, window_bounds = array<i64: 1, 128>}, {transform_indices = @transform_3, window_bounds = array<i64: 16, 128>}]} {
    %c0 = arith.constant 0 : index
    %c0_0 = arith.constant 0 : index
    %0 = vector.load %arg2[%c0, %c0_0] : memref<16x768xf32, #tpu.memory_space<vmem>>, vector<16x768xf32>
    %1 = arith.truncf %0 : vector<16x768xf32> to vector<16x768xbf16>
    %c16_i32 = arith.constant 16 : i32
    %2 = arith.muli %arg0, %c16_i32 : i32
    %c0_1 = arith.constant 0 : index
    %3 = memref.load %arg1[%c0_1] : memref<1xi32, #tpu.memory_space<smem>>
    %4 = tpu.iota {dimensions = array<i32: 0>} : vector<16x768xi32>
    %5 = tpu.iota {dimensions = array<i32: 1>} : vector<16x768xi32>
    %6 = vector.broadcast %2 : i32 to vector<16x768xi32>
    %7 = arith.addi %6, %4 : vector<16x768xi32>
    %c768_i32 = arith.constant 768 : i32
    %8 = vector.broadcast %c768_i32 : i32 to vector<16x768xi32>
    %9 = arith.muli %7, %8 : vector<16x768xi32>
    %10 = arith.addi %9, %5 : vector<16x768xi32>
    %c1640531527_i32 = arith.constant 1640531527 : i32
    %11 = arith.muli %3, %c1640531527_i32 : i32
    %12 = vector.broadcast %11 : i32 to vector<16x768xi32>
    %13 = arith.xori %10, %12 : vector<16x768xi32>
    %c16_i32_2 = arith.constant 16 : i32
    %14 = vector.broadcast %c16_i32_2 : i32 to vector<16x768xi32>
    %15 = arith.shrui %13, %14 : vector<16x768xi32>
    %16 = arith.xori %13, %15 : vector<16x768xi32>
    %c73244475_i32 = arith.constant 73244475 : i32
    %17 = vector.broadcast %c73244475_i32 : i32 to vector<16x768xi32>
    %18 = arith.muli %16, %17 : vector<16x768xi32>
    %c16_i32_3 = arith.constant 16 : i32
    %19 = vector.broadcast %c16_i32_3 : i32 to vector<16x768xi32>
    %20 = arith.shrui %18, %19 : vector<16x768xi32>
    %21 = arith.xori %18, %20 : vector<16x768xi32>
    %c73244475_i32_4 = arith.constant 73244475 : i32
    %22 = vector.broadcast %c73244475_i32_4 : i32 to vector<16x768xi32>
    %23 = arith.muli %21, %22 : vector<16x768xi32>
    %c16_i32_5 = arith.constant 16 : i32
    %24 = vector.broadcast %c16_i32_5 : i32 to vector<16x768xi32>
    %25 = arith.shrui %23, %24 : vector<16x768xi32>
    %26 = arith.xori %23, %25 : vector<16x768xi32>
    %c2147483647_i32 = arith.constant 2147483647 : i32
    %27 = vector.broadcast %c2147483647_i32 : i32 to vector<16x768xi32>
    %28 = arith.andi %26, %27 : vector<16x768xi32>
    %c1932735283_i32 = arith.constant 1932735283 : i32
    %29 = vector.broadcast %c1932735283_i32 : i32 to vector<16x768xi32>
    %30 = arith.cmpi slt, %28, %29 : vector<16x768xi32>
    %cst = arith.constant 0.000000e+00 : bf16
    %31 = vector.broadcast %cst : bf16 to vector<16x768xbf16>
    %32 = arith.select %30, %1, %31 : vector<16x768xi1>, vector<16x768xbf16>
    %c0_6 = arith.constant 0 : index
    %c0_7 = arith.constant 0 : index
    %33 = vector.load %arg3[%c0_6, %c0_7] : memref<768x128xbf16, #tpu.memory_space<vmem>>, vector<768x128xbf16>
    %cst_8 = arith.constant dense<0.000000e+00> : vector<16x128xf32>
    %34 = tpu.matmul %32, %33, %cst_8 {dimension_numbers = #tpu.dot_dimension_numbers<[1], [0], [0], [1], [0, 0, 1, 1], [], []>} : vector<16x768xbf16>, vector<768x128xbf16>, vector<16x128xf32> -> vector<16x128xf32>
    %c0_9 = arith.constant 0 : index
    %c0_10 = arith.constant 0 : index
    %35 = vector.load %arg4[%c0_9, %c0_10] : memref<1x128xf32, #tpu.memory_space<vmem>>, vector<1x128xf32>
    %36 = vector.broadcast %35 : vector<1x128xf32> to vector<16x128xf32>
    %37 = arith.addf %34, %36 : vector<16x128xf32>
    %c0_11 = arith.constant 0 : index
    %c0_12 = arith.constant 0 : index
    %38 = vector.load %arg5[%c0_11, %c0_12] : memref<16x128xf32, #tpu.memory_space<vmem>>, vector<16x128xf32>
    tpu.vector_store %arg5[%c0_11, %c0_12], %37 {strides = array<i32>} : memref<16x128xf32, #tpu.memory_space<vmem>>, vector<16x128xf32>,
    return
  }
  func.func @transform_0(%arg0: i32, %arg1: memref<1xi32, #tpu.memory_space<smem>>) -> (i32, i32) {
    %c0_i32 = arith.constant 0 : i32
    %c0_i32_0 = arith.constant 0 : i32
    return %arg0, %c0_i32 : i32, i32
  }
  func.func @transform_1(%arg0: i32, %arg1: memref<1xi32, #tpu.memory_space<smem>>) -> (i32, i32) {
    %c0_i32 = arith.constant 0 : i32
    %c0_i32_0 = arith.constant 0 : i32
    %c0_i32_1 = arith.constant 0 : i32
    return %c0_i32, %c0_i32_0 : i32, i32
  }
  func.func @transform_2(%arg0: i32, %arg1: memref<1xi32, #tpu.memory_space<smem>>) -> (i32, i32) {
    %c0_i32 = arith.constant 0 : i32
    %c0_i32_0 = arith.constant 0 : i32
    %c0_i32_1 = arith.constant 0 : i32
    return %c0_i32, %c0_i32_0 : i32, i32
  }
  func.func @transform_3(%arg0: i32, %arg1: memref<1xi32, #tpu.memory_space<smem>>) -> (i32, i32) {
    %c0_i32 = arith.constant 0 : i32
    %c0_i32_0 = arith.constant 0 : i32
    return %arg0, %c0_i32 : i32, i32
  }
}

</mosaic_0001>

<bundles_post_ra>
// kernel: tpu_custom_call.1
= control target key start
LH: loop header
LB: loop body
LE: loop exit
PB: predicated region body
PF: predicated region fallthrough
CT: control target
= control target key end

     0   :  { %10 = vsyncpa [#allocation5], 0  ;;  %s1243_s0 = inlined_call_operand.<no memory space> [shape: s32[1], index: 0, kind: input, shape index: {}]   ;;  %s1244_s1 = inlined_call_operand.hbm [shape: f32[16,768], index: 1, kind: input, shape index: {}]   ;;  %s1245_s2 = inlined_call_operand.hbm [shape: bf16[768,128], index: 2, kind: input, shape index: {}]   ;;  %s1246_s3 = inlined_call_operand.vmem [shape: f32[1,128], index: 3, kind: input, shape index: {}]   ;;  %s1247_s4 = inlined_call_operand.hbm [shape: f32[16,128], index: 4, kind: output, shape index: {}]  }
   0x1   :  { %11 = vsyncpa [#allocation8], 0 }
   0x2   :  { %12 = vsyncpa [#allocation6], 0  ;;  %s17_s17 = sshll.u32 %s1244_s1, 4  ;;  %s1095_s18 = smov [#allocation4]   ;;  %s18_s17 = int_to_ptr.hbm [resolvable:$true] %s17_s17 }
   0x3   :  { %s19_s19 = sshll.u32 %s1095_s18, 4  ;;  %s30_s22 = sshll.u32 %s1245_s2, 4  ;;  %s20_s19 = int_to_ptr.vmem [resolvable:$true] %s19_s19  ;;  %s31_s22 = int_to_ptr.hbm [resolvable:$true] %s30_s22 }
   0x4   :  { %s1096_s23 = smov 768   ;;  %s1097_s24 = smov 48  }
   0x5   :  { %25 = dma.hbm_to_vmem [thread:$0]  %s18_s17, 1536, %s20_s19, [#allocation5], %s1096_s23, %s1096_s23, %s1097_s24  }
   0x6   :  { %s1098_s25 = smov [#allocation7]   ;;  %s1099_s27 = smov 64  }
   0x7   :  { %s32_s26 = sshll.u32 %s1098_s25, 4  ;;  %s1100_s28 = smov 4   ;;  %s33_s26 = int_to_ptr.vmem [resolvable:$true] %s32_s26 }
   0x8   :  { %38 = dma.hbm_to_vmem [thread:$0]  %s31_s22, 6144, %s33_s26, [#allocation8], %s1099_s27, %s1099_s27, %s1100_s28  }
   0x9   :  { %1089 = dma.done.wait [#allocation5], 1536  }
   0xa   :  { %1090 = vsyncadd [#allocation5], 4294965760 }
   0xb   :  { %1091 = dma.done.wait [#allocation8], 6144  }
   0xc   :  { %1092 = vsyncadd [#allocation8], 4294961152  ;;  %v70_v0 = vlaneseq  ;;  %s97_s30 = smul.u32 1640531527, %s1243_s0  ;;  %v966_v13 = vld [vmem:[#allocation7 + $0x38] sm:$0xff]  ;;  %v965_v22 = vld [vmem:[#allocation7 + $0x30] sm:$0xff] }
   0xd   :  { %v974_v14 = vld [vmem:[#allocation7 + $0x78] sm:$0xff]  ;;  %661 = vmatpush.bf16.msra.mxu0 %v966_v13  ;;  %v973_v23 = vld [vmem:[#allocation7 + $0x70] sm:$0xff]  ;;  %v964_v42 = vld [vmem:[#allocation7 + $0x28] sm:$0xff]  ;;  %s753_s8 = sshll.u32 %s1247_s4, 4  ;;  %s1102_s9 = smov 128   ;;  %s754_s8 = int_to_ptr.hbm [resolvable:$true] %s753_s8 }
   0xe   :  { %v71_v1 = vshrl.u32 %v70_v0, 7  ;;  %v74_v2 = vand.u32 127, %v70_v0  ;;  %v1140_v7 = vstv %s97_s30  ;;  %v982_v15 = vld [vmem:[#allocation7 + $0xb8] sm:$0xff]  ;;  %675 = vmatpush.bf16.msra.mxu1 %v974_v14  ;;  %v981_v28 = vld [vmem:[#allocation7 + $0xb0] sm:$0xff]  ;;  %v972_v43 = vld [vmem:[#allocation7 + $0x68] sm:$0xff]  ;;  %s1103_s10 = smov 8  }
   0xf   :  { %v990_v17 = vld [vmem:[#allocation7 + $0xf8] sm:$0xff]  ;;  %689 = vmatpush.bf16.msra.mxu2 %v982_v15  ;;  %v989_v29 = vld [vmem:[#allocation7 + $0xf0] sm:$0xff]  ;;  %v980_v48 = vld [vmem:[#allocation7 + $0xa8] sm:$0xff] }
  0x10   :  { %v72_v3 = vadd.s32 8, %v71_v1  ;;  %v76_v4 = vadd.s32 256, %v74_v2  ;;  %v77_v5 = vadd.s32 384, %v74_v2  ;;  %v1138_v6 = vmul.u32 768, %v71_v1  ;;  %703 = vmatpush.bf16.msra.mxu3 %v990_v17  ;;  %v988_v49 = vld [vmem:[#allocation7 + $0xe8] sm:$0xff]  ;;  %v963_v59 = vld [vmem:[#allocation7 + $0x20] sm:$0xff] }
  0x11   :  { %v75_v8 = vadd.s32 128, %v74_v2  ;;  %v78_v27 = vadd.s32 512, %v74_v2  ;;  %662 = vmatpush.bf16.msra.mxu0 %v965_v22  ;;  %v79_v47 = vadd.s32 640, %v74_v2  ;;  %v971_v60 = vld [vmem:[#allocation7 + $0x60] sm:$0xff] }
  0x12   :  { %v1142_v9 = vmul.u32 768, %v72_v3  ;;  %v87_v10 = vadd.s32 %v1138_v6, %v76_v4  ;;  %v88_v11 = vadd.s32 %v1138_v6, %v77_v5  ;;  %v85_v12 = vadd.s32 %v1138_v6, %v74_v2  ;;  %676 = vmatpush.bf16.msra.mxu1 %v973_v23  ;;  %v979_v1 = vld [vmem:[#allocation7 + $0xa0] sm:$0xff] }
  0x13   :  { %v86_v16 = vadd.s32 %v1138_v6, %v75_v8  ;;  %690 = vmatpush.bf16.msra.mxu2 %v981_v28  ;;  %v89_v58 = vadd.s32 %v1138_v6, %v78_v27  ;;  %v90_v0 = vadd.s32 %v1138_v6, %v79_v47 }
  0x14   :  { %v93_v18 = vadd.s32 %v1142_v9, %v76_v4  ;;  %v94_v19 = vadd.s32 %v1142_v9, %v77_v5  ;;  %v101_v20 = vxor.u32 %v1140_v7, %v87_v10  ;;  %v102_v21 = vxor.u32 %v1140_v7, %v88_v11  ;;  %704 = vmatpush.bf16.msra.mxu3 %v989_v29  ;;  %v1166_v10 = vld [vmem:[#allocation4 + $0x10] sm:$0xff]  ;;  %v1168_v11 = vld [vmem:[#allocation4 + $0x18] sm:$0xff] }
  0x15   :  { %v91_v24 = vadd.s32 %v1142_v9, %v74_v2  ;;  %v92_v25 = vadd.s32 %v1142_v9, %v75_v8  ;;  %v99_v26 = vxor.u32 %v1140_v7, %v85_v12  ;;  %v100_v34 = vxor.u32 %v1140_v7, %v86_v16  ;;  %663 = vmatpush.bf16.msra.mxu0 %v964_v42  ;;  %v987_v2 = vld [vmem:[#allocation7 + $0xe0] sm:$0xff] }
  0x16   :  { %v107_v30 = vxor.u32 %v1140_v7, %v93_v18  ;;  %v108_v31 = vxor.u32 %v1140_v7, %v94_v19  ;;  %v113_v32 = vshrl.u32 %v101_v20, 16  ;;  %v114_v33 = vshrl.u32 %v102_v21, 16  ;;  %677 = vmatpush.bf16.msra.mxu1 %v972_v43  ;;  %v962_v19 = vld [vmem:[#allocation7 + $0x18] sm:$0xff]  ;;  %v58_v42 = vld [vmem:[#allocation4 + $0x40] sm:$0xff]  ;;  %v59_v43 = vld [vmem:[#allocation4 + $0x48] sm:$0xff] }
  0x17   :  { %v105_v35 = vxor.u32 %v1140_v7, %v91_v24  ;;  %v106_v36 = vxor.u32 %v1140_v7, %v92_v25  ;;  %v111_v37 = vshrl.u32 %v99_v26, 16  ;;  %v112_v44 = vshrl.u32 %v100_v34, 16  ;;  %691 = vmatpush.bf16.msra.mxu2 %v980_v48 }
  0x18   :  { %v119_v38 = vshrl.u32 %v107_v30, 16  ;;  %v120_v39 = vshrl.u32 %v108_v31, 16  ;;  %v125_v40 = vxor.u32 %v113_v32, %v101_v20  ;;  %v126_v41 = vxor.u32 %v114_v33, %v102_v21  ;;  %705 = vmatpush.bf16.msra.mxu3 %v988_v49  ;;  %v970_v20 = vld [vmem:[#allocation7 + $0x58] sm:$0xff] }
  0x19   :  { %v117_v45 = vshrl.u32 %v105_v35, 16  ;;  %v118_v46 = vshrl.u32 %v106_v36, 16  ;;  %v123_v53 = vxor.u32 %v111_v37, %v99_v26  ;;  %v1160_v55 = vxor.u32 %v112_v44, %v100_v34  ;;  %664 = vmatpush.bf16.msra.mxu0 %v963_v59  ;;  %v978_v21 = vld [vmem:[#allocation7 + $0x98] sm:$0xff]  ;;  %v961_v34 = vld [vmem:[#allocation7 + $0x10] sm:$0xff] }
  0x1a   :  { %v131_v50 = vxor.u32 %v119_v38, %v107_v30  ;;  %v132_v51 = vxor.u32 %v120_v39, %v108_v31  ;;  %v137_v52 = vmul.u32 73244475, %v125_v40  ;;  %v138_v54 = vmul.u32 73244475, %v126_v41  ;;  %678 = vmatpush.bf16.msra.mxu1 %v971_v60  ;;  %v986_v26 = vld [vmem:[#allocation7 + $0xd8] sm:$0xff]  ;;  %v985_v41 = vld [vmem:[#allocation7 + $0xd0] sm:$0xff] }
  0x1b   :  { %v1163_v63 = vxor.u32 %v117_v45, %v105_v35  ;;  %v130_v5 = vxor.u32 %v118_v46, %v106_v36  ;;  %v135_v8 = vmul.u32 73244475, %v123_v53  ;;  %v136_v14 = vmul.u32 73244475, %v1160_v55  ;;  %692 = vmatpush.bf16.msra.mxu2 %v979_v1  ;;  %v969_v35 = vld [vmem:[#allocation7 + $0x50] sm:$0xff]  ;;  %v968_v55 = vld [vmem:[#allocation7 + $0x48] sm:$0xff] }
  0x1c   :  { %v143_v56 = vmul.u32 73244475, %v131_v50  ;;  %v149_v57 = vshrl.u32 %v137_v52, 16  ;;  %v144_v61 = vmul.u32 73244475, %v132_v51  ;;  %v150_v62 = vshrl.u32 %v138_v54, 16  ;;  %706 = vmatpush.bf16.msra.mxu3 %v987_v2 }
  0x1d   :  { %v95_v15 = vadd.s32 %v1142_v9, %v78_v27  ;;  %v147_v17 = vshrl.u32 %v135_v8, 16  ;;  %v1173_v18 = vadd.s32 %v1142_v9, %v79_v47  ;;  %v1176_v24 = vxor.u32 %v1140_v7, %v89_v58  ;;  %v977_v36 = vld [vmem:[#allocation7 + $0x90] sm:$0xff]  ;;  %665 = vmatpush.bf16.msra.mxu0 %v962_v19  ;;  %v1184_v50 = vld [vmem:[#allocation4] sm:$0xff]  ;;  %v1186_v51 = vld [vmem:[#allocation4 + $0x8] sm:$0xff] }
  0x1e   :  { %v155_v3 = vshrl.u32 %v143_v56, 16  ;;  %v161_v4 = vxor.u32 %v149_v57, %v137_v52  ;;  %v156_v12 = vshrl.u32 %v144_v61, 16  ;;  %v162_v13 = vxor.u32 %v150_v62, %v138_v54  ;;  %679 = vmatpush.bf16.msra.mxu1 %v970_v20  ;;  %v960_v54 = vld [vmem:[#allocation7 + $0x8] sm:$0xff] }
  0x1f   :  { %v1179_v25 = vxor.u32 %v1140_v7, %v90_v0  ;;  %v63_v9 = vpack.c.bf16 %v1168_v11, %v1166_v10  ;;  %v141_v29 = vmul.u32 73244475, %v1163_v63  ;;  %v142_v32 = vmul.u32 73244475, %v130_v5  ;;  %693 = vmatpush.bf16.msra.mxu2 %v978_v21  ;;  %v976_v60 = vld [vmem:[#allocation7 + $0x88] sm:$0xff] }
  0x20   :  { %v167_v16 = vxor.u32 %v155_v3, %v143_v56  ;;  %v173_v6 = vmul.u32 73244475, %v161_v4  ;;  %v168_v22 = vxor.u32 %v156_v12, %v144_v61  ;;  %v174_v23 = vmul.u32 73244475, %v162_v13  ;;  %707 = vmatpush.bf16.msra.mxu3 %v986_v26  ;;  %v984_v4 = vld [vmem:[#allocation7 + $0xc8] sm:$0xff]  ;;  %v959_v12 = vld [vmem:[#allocation7] sm:$0xff] }
  0x21   :  { %v148_v33 = vshrl.u32 %v136_v14, 16  ;;  %v153_v39 = vshrl.u32 %v141_v29, 16  ;;  %v159_v40 = vxor.u32 %v147_v17, %v135_v8  ;;  %v154_v46 = vshrl.u32 %v142_v32, 16  ;;  %666 = vmatpush.bf16.msra.mxu0 %v961_v34  ;;  %v57_v17 = vld [vmem:[#allocation4 + $0x38] sm:$0xff]  ;;  %v996_v62 = vld [vmem:[#allocation7 + $0x128] sm:$0xff] }
  0x22   :  { %v179_v27 = vmul.u32 73244475, %v167_v16  ;;  %v185_v28 = vshrl.u32 %v173_v6, 16  ;;  %v180_v30 = vmul.u32 73244475, %v168_v22  ;;  %v186_v31 = vshrl.u32 %v174_v23, 16  ;;  %680 = vmatpush.bf16.msra.mxu1 %v969_v35 }
  0x23   :  { %v160_v47 = vxor.u32 %v148_v33, %v136_v14  ;;  %v165_v52 = vxor.u32 %v153_v39, %v141_v29  ;;  %v171_v53 = vmul.u32 73244475, %v159_v40  ;;  %v166_v58 = vxor.u32 %v154_v46, %v142_v32  ;;  %694 = vmatpush.bf16.msra.mxu2 %v977_v36  ;;  %v998_v26 = vld [vmem:[#allocation7 + $0x138] sm:$0xff]  ;;  %v975_v35 = vld [vmem:[#allocation7 + $0x80] sm:$0xff]  ;;  %v1005_v46 = vld [vmem:[#allocation7 + $0x170] sm:$0xff] }
  0x24   :  { %v191_v37 = vshrl.u32 %v179_v27, 16  ;;  %v197_v38 = vxor.u32 %v185_v28, %v173_v6  ;;  %v192_v44 = vshrl.u32 %v180_v30, 16  ;;  %v198_v45 = vxor.u32 %v186_v31, %v174_v23  ;;  %708 = vmatpush.bf16.msra.mxu3 %v985_v41  ;;  %v56_v6 = vld [vmem:[#allocation4 + $0x30] sm:$0xff]  ;;  %v967_v23 = vld [vmem:[#allocation7 + $0x40] sm:$0xff]  ;;  %v992_v39 = vld [vmem:[#allocation7 + $0x108] sm:$0xff] }
  0x25   :  { %v172_v59 = vmul.u32 73244475, %v160_v47  ;;  %v177_v63 = vmul.u32 73244475, %v165_v52  ;;  %v1193_v0 = vxor.u32 %v1140_v7, %v95_v15  ;;  %v66_v1 = vpack.c.bf16 %v59_v43, %v58_v42  ;;  %667 = vmatpush.bf16.msra.mxu0 %v960_v54  ;;  %v983_v36 = vld [vmem:[#allocation7 + $0xc0] sm:$0xff]  ;;  %v1000_v40 = vld [vmem:[#allocation7 + $0x148] sm:$0xff] }
  0x26   :  { %v203_v48 = vxor.u32 %v191_v37, %v179_v27  ;;  %v209_v49 = vand.u32 2147483647, %v197_v38  ;;  %v204_v56 = vxor.u32 %v192_v44, %v180_v30  ;;  %v210_v57 = vand.u32 2147483647, %v198_v45  ;;  %681 = vmatpush.bf16.msra.mxu1 %v968_v55  ;;  %v997_v45 = vld [vmem:[#allocation7 + $0x130] sm:$0xff] }
  0x27   :  { %v178_v3 = vmul.u32 73244475, %v166_v58  ;;  %v183_v8 = vshrl.u32 %v171_v53, 16  ;;  %v184_v10 = vshrl.u32 %v172_v59, 16  ;;  %v189_v11 = vshrl.u32 %v177_v63, 16  ;;  %695 = vmatpush.bf16.msra.mxu2 %v976_v60 }
  0x28   :  { %v215_v61 = vand.u32 2147483647, %v203_v48  ;;  %vm1188_vm0 = vcmp.lt.s32.totalorder %v209_v49, 1932735283  ;;  %v216_v2 = vand.u32 2147483647, %v204_v56  ;;  %v62_v15 = vpack.c.bf16 %v1186_v51, %v1184_v50  ;;  %709 = vmatpush.bf16.msra.mxu3 %v984_v4 }
  0x29   :  { %vm222_vm1 = vcmp.lt.s32.totalorder %v210_v57, 1932735283  ;;  %v190_v16 = vshrl.u32 %v178_v3, 16  ;;  %v195_v19 = vxor.u32 %v183_v8, %v171_v53  ;;  %v196_v20 = vxor.u32 %v184_v10, %v172_v59  ;;  %668 = vmatpush.bf16.msra.mxu0 %v959_v12  ;;  %v995_v10 = vld [vmem:[#allocation7 + $0x120] sm:$0xff] }
  0x2a   :  { %vm1195_vm2 = vcmp.lt.s32.totalorder %v215_v61, 1932735283  ;;  %vm232_vm3 = vmpackc.low %vm222_vm1, %vm1188_vm0  ;;  %vm1201_vm4 = vcmp.lt.s32.totalorder %v216_v2, 1932735283  ;;  %v201_v21 = vxor.u32 %v189_v11, %v177_v63  ;;  %v110_v22 = vxor.u32 %v1140_v7, %v1173_v18  ;;  %682 = vmatpush.bf16.msra.mxu1 %v967_v23  ;;  %v1004_v63 = vld [vmem:[#allocation7 + $0x168] sm:$0xff]  ;;  %v1003_v11 = vld [vmem:[#allocation7 + $0x160] sm:$0xff] }
  0x2b   :  { %v238_v14 = vsel %vm232_vm3, %v63_v9, 0  ;;  %vm235_vm5 = vmpackc.low %vm1201_vm4, %vm1195_vm2  ;;  %v1006_v9 = vld [vmem:[#allocation7 + $0x178] sm:$0xff]  ;;  %v202_v29 = vxor.u32 %v190_v16, %v178_v3  ;;  %v207_v32 = vand.u32 2147483647, %v195_v19  ;;  %v208_v33 = vand.u32 2147483647, %v196_v20  ;;  %696 = vmatpush.bf16.msra.mxu2 %v975_v35 }
  0x2c   :  { %v241_v27 = vsel %vm235_vm5, %v66_v1, 0  ;;  %v351_v28 = vunpack.c.l.b16 %v238_v14  ;;  %v352_v30 = vunpack.c.h.b16 %v238_v14  ;;  %v213_v34 = vand.u32 2147483647, %v201_v21  ;;  %710 = vmatpush.bf16.msra.mxu3 %v983_v36  ;;  %v994_v20 = vld [vmem:[#allocation7 + $0x118] sm:$0xff]  ;;  %v993_v35 = vld [vmem:[#allocation7 + $0x110] sm:$0xff] }
  0x2d   :  { %v357_v31 = vunpack.c.l.b16 %v241_v27  ;;  %v65_v37 = vpack.c.bf16 %v57_v17, %v56_v6  ;;  %v214_v38 = vand.u32 2147483647, %v202_v29  ;;  %v358_v7 = vunpack.c.h.b16 %v241_v27  ;;  %717 = vmatpush.bf16.msrb.mxu0 %v998_v26  ;;  %v1002_v21 = vld [vmem:[#allocation7 + $0x158] sm:$0xff]  ;;  %v60_v27 = vld [vmem:[#allocation4 + $0x50] sm:$0xff] }
  0x2e   :  { %v115_v18 = vshrl.u32 %v1176_v24, 16  ;;  %vm1214_vm6 = vcmp.lt.s32.totalorder %v207_v32, 1932735283  ;;  %vm220_vm7 = vcmp.lt.s32.totalorder %v208_v33, 1932735283  ;;  %v116_v43 = vshrl.u32 %v1179_v25, 16  ;;  %731 = vmatpush.bf16.msrb.mxu1 %v1006_v9 }
  0x2f   :  { %vm1218_vm8 = vcmp.lt.s32.totalorder %v213_v34, 1932735283  ;;  %v363_v41 = vpack.c.b16 %v357_v31, %v351_v28  ;;  %vm1222_vm9 = vcmp.lt.s32.totalorder %v214_v38, 1932735283  ;;  %vm231_vm10 = vmpackc.low %vm220_vm7, %vm1214_vm6  ;;  %v121_v44 = vshrl.u32 %v1193_v0, 16  ;;  %v55_v9 = vld [vmem:[#allocation4 + $0x28] sm:$0xff] }
  0x30   :  { %vm234_vm11 = vmpackc.low %vm1222_vm9, %vm1218_vm8  ;;  %v237_v47 = vsel %vm231_vm10, %v62_v15, 0  ;;  %v364_v48 = vpack.c.b16 %v358_v7, %v352_v30  ;;  %v122_v49 = vshrl.u32 %v110_v22, 16  ;;  %v127_v50 = vxor.u32 %v115_v18, %v1176_v24  ;;  %v61_v28 = vld [vmem:[#allocation4 + $0x58] sm:$0xff]  ;;  %v1001_v36 = vld [vmem:[#allocation7 + $0x150] sm:$0xff] }
  0x31   :  { %v240_v51 = vsel %vm234_vm11, %v65_v37, 0  ;;  %v349_v52 = vunpack.c.l.b16 %v237_v47  ;;  %v350_v53 = vunpack.c.h.b16 %v237_v47  ;;  %v128_v54 = vxor.u32 %v116_v43, %v1179_v25  ;;  %718 = vmatpush.bf16.msrb.mxu0 %v997_v45  ;;  %697 = vmatmul.bf16.vlgmr.msra.gmra.mxu2 %v363_v41  ;;  %v991_v47 = vld [vmem:[#allocation7 + $0x100] sm:$0xff] }
  0x32   :  { %v355_v55 = vunpack.c.l.b16 %v240_v51  ;;  %v356_v56 = vunpack.c.h.b16 %v240_v51  ;;  %v133_v57 = vxor.u32 %v121_v44, %v1193_v0  ;;  %v134_v58 = vxor.u32 %v122_v49, %v110_v22  ;;  %732 = vmatpush.bf16.msrb.mxu1 %v1005_v46  ;;  %711 = vmatmul.bf16.vlgmr.msra.gmra.mxu3 %v364_v48  ;;  %v54_v22 = vld [vmem:[#allocation4 + $0x20] sm:$0xff] }
  0x33   :  { %v139_v59 = vmul.u32 73244475, %v127_v50  ;;  %v140_v60 = vmul.u32 73244475, %v128_v54  ;;  %v64_v37 = vpack.c.bf16 %v55_v9, %v54_v22  ;;  %v67_v38 = vpack.c.bf16 %v61_v28, %v60_v27  ;;  %v999_v48 = vld [vmem:[#allocation7 + $0x140] sm:$0xff] }
  0x34   :  { %v361_v61 = vpack.c.b16 %v355_v55, %v349_v52  ;;  %v362_v24 = vpack.c.b16 %v356_v56, %v350_v53  ;;  %v145_v1 = vmul.u32 73244475, %v133_v57  ;;  %v146_v2 = vmul.u32 73244475, %v134_v58  ;;  %v1016_v53 = vld [vmem:[%s1246_s3] ss:$0 sm:$0xff] }
  0x35   :  { %v151_v3 = vshrl.u32 %v139_v59, 16  ;;  %v152_v4 = vshrl.u32 %v140_v60, 16  ;;  %719 = vmatpush.bf16.msrb.mxu0 %v996_v62  ;;  %s1101_s3 = smov [#allocation9]  }
  0x36   :  { %669 = vmatmul.bf16.vlgmr.msra.gmra.mxu0 %v361_v61  ;;  %683 = vmatmul.bf16.vlgmr.msra.gmra.mxu1 %v362_v24  ;;  %v157_v25 = vshrl.u32 %v145_v1, 16  ;;  %v158_v5 = vshrl.u32 %v146_v2, 16  ;;  %s751_s5 = sshll.u32 %s1101_s3, 4  ;;  %s752_s5 = int_to_ptr.vmem [resolvable:$true] %s751_s5 }
  0x37   :  { %v163_v0 = vxor.u32 %v151_v3, %v139_v59  ;;  %v164_v8 = vxor.u32 %v152_v4, %v140_v60  ;;  %733 = vmatpush.bf16.msrb.mxu1 %v1004_v63 }
  0x38   :  { %v169_v12 = vxor.u32 %v157_v25, %v145_v1  ;;  %v170_v13 = vxor.u32 %v158_v5, %v146_v2 }
  0x39   :  { %v175_v14 = vmul.u32 73244475, %v163_v0  ;;  %v176_v15 = vmul.u32 73244475, %v164_v8  ;;  %720 = vmatpush.bf16.msrb.mxu0 %v995_v10 }
  0x3a   :  { %v181_v16 = vmul.u32 73244475, %v169_v12  ;;  %v182_v6 = vmul.u32 73244475, %v170_v13 }
  0x3b   :  { %v187_v17 = vshrl.u32 %v175_v14, 16  ;;  %v188_v19 = vshrl.u32 %v176_v15, 16  ;;  %734 = vmatpush.bf16.msrb.mxu1 %v1003_v11 }
  0x3c   :  { %v193_v23 = vshrl.u32 %v181_v16, 16  ;;  %v194_v26 = vshrl.u32 %v182_v6, 16 }
  0x3d   :  { %v199_v29 = vxor.u32 %v187_v17, %v175_v14  ;;  %v200_v30 = vxor.u32 %v188_v19, %v176_v15  ;;  %721 = vmatpush.bf16.msrb.mxu0 %v994_v20 }
  0x3e   :  { %v205_v31 = vxor.u32 %v193_v23, %v181_v16  ;;  %v206_v32 = vxor.u32 %v194_v26, %v182_v6 }
  0x3f   :  { %v211_v33 = vand.u32 2147483647, %v199_v29  ;;  %v212_v34 = vand.u32 2147483647, %v200_v30  ;;  %735 = vmatpush.bf16.msrb.mxu1 %v1002_v21 }
  0x40   :  { %v217_v7 = vand.u32 2147483647, %v205_v31  ;;  %v218_v18 = vand.u32 2147483647, %v206_v32 }
  0x41   :  { %vm223_vm12 = vcmp.lt.s32.totalorder %v211_v33, 1932735283  ;;  %vm224_vm13 = vcmp.lt.s32.totalorder %v212_v34, 1932735283  ;;  %722 = vmatpush.bf16.msrb.mxu0 %v993_v35 }
  0x42   :  { %vm229_vm14 = vcmp.lt.s32.totalorder %v217_v7, 1932735283  ;;  %vm230_vm15 = vcmp.lt.s32.totalorder %v218_v18, 1932735283  ;;  %vm233_vm0 = vmpackc.low %vm224_vm13, %vm223_vm12 }
  0x43   :  { %vm236_vm1 = vmpackc.low %vm230_vm15, %vm229_vm14  ;;  %736 = vmatpush.bf16.msrb.mxu1 %v1001_v36  ;;  %v239_v41 = vsel %vm233_vm0, %v64_v37, 0 }
  0x44   :  { %v242_v42 = vsel %vm236_vm1, %v67_v38, 0  ;;  %v353_v43 = vunpack.c.l.b16 %v239_v41  ;;  %v354_v45 = vunpack.c.h.b16 %v239_v41 }
  0x45   :  { %v359_v44 = vunpack.c.l.b16 %v242_v42  ;;  %v360_v46 = vunpack.c.h.b16 %v242_v42  ;;  %723 = vmatpush.bf16.msrb.mxu0 %v992_v39 }
  0x47   :  { %737 = vmatpush.bf16.msrb.mxu1 %v1000_v40  ;;  %v365_v49 = vpack.c.b16 %v359_v44, %v353_v43  ;;  %v366_v50 = vpack.c.b16 %v360_v46, %v354_v45 }
  0x49   :  { %724 = vmatpush.bf16.msrb.mxu0 %v991_v47 }
  0x4b   :  { %738 = vmatpush.bf16.msrb.mxu1 %v999_v48 }
  0x4c   :  { %725 = vmatmul.bf16.vlgmr.msrb.gmra.mxu0 %v365_v49 }
  0x4e   :  { %739 = vmatmul.bf16.vlgmr.msrb.gmra.mxu1 %v366_v50 }
  0xb3   :  { %v670_v51 = vpop.f32.mrf.mxu0  ;;  %v684_v52 = vpop.f32.mrf.mxu1 }
  0xb4   :  { %v671_v54 = vadd.f32 %v1016_v53, %v670_v51  ;;  %v698_v55 = vpop.f32.mrf.mxu2 }
  0xb5   :  { %v712_v59 = vpop.f32.mrf.mxu3 }
  0xb6   :  { %v685_v56 = vadd.f32 %v684_v52, %v671_v54 }
  0xb8   :  { %v699_v60 = vadd.f32 %v698_v55, %v685_v56 }
  0xba   :  { %v713_v62 = vadd.f32 %v712_v59, %v699_v60 }
  0xbb   :  { %v672_v57 = vpop.f32.mrf.mxu0  ;;  %v686_v58 = vpop.f32.mrf.mxu1 }
  0xbc   :  { %v673_v61 = vadd.f32 %v1016_v53, %v672_v57  ;;  %v700_v24 = vpop.f32.mrf.mxu2 }
  0xbd   :  { %v714_v5 = vpop.f32.mrf.mxu3 }
  0xbe   :  { %v687_v63 = vadd.f32 %v686_v58, %v673_v61 }
  0xc0   :  { %v701_v4 = vadd.f32 %v700_v24, %v687_v63 }
  0xc2   :  { %v715_v0 = vadd.f32 %v714_v5, %v701_v4 }
  0xc9   :  { %v726_v1 = vpop.f32.mrf.mxu0 }
  0xca   :  { %v727_v3 = vadd.f32 %v726_v1, %v713_v62 }
  0xcb   :  { %v740_v2 = vpop.f32.mrf.mxu1 }
  0xcc   :  { %v741_v25 = vadd.f32 %v740_v2, %v727_v3 }
  0xce   :  { %745 = vst [vmem:[#allocation9] sm:$0xff] %v741_v25 }
  0xd1   :  { %v728_v8 = vpop.f32.mrf.mxu0 }
  0xd2   :  { %v729_v10 = vadd.f32 %v728_v8, %v715_v0 }
  0xd3   :  { %v742_v11 = vpop.f32.mrf.mxu1 }
  0xd4   :  { %v743_v12 = vadd.f32 %v742_v11, %v729_v10 }
  0xd6   :  { %746 = vst [vmem:[#allocation9 + $0x8] sm:$0xff] %v743_v12 }
  0xd7   :  { %759 = dma.vmem_to_hbm [thread:$0]  %s752_s5, 256, %s754_s8, [#allocation6], %s1102_s9, %s1102_s9, %s1103_s10  }
  0xd8   :  { %1093 = dma.done.wait [#allocation6], 256  }
  0xd9   :  { %1094 = vsyncadd [#allocation6], 4294967040 }
  0xda   :  { %764 = vsyncpa [#allocation5], 1 }
  0xdb   :  { %765 = vsyncpa [#allocation8], 1 }
  0xdc   :  { %766 = vsyncpa [#allocation6], 1 }

</bundles_post_ra>
